<compile_context>
chip_gen: v7x
topology: tpu7x:2x2x1
jax: 0.10.0
libtpu: 0.0.40
codegen_flags: <defaults>
</compile_context>

<pallas_src>
import jax
import jax.numpy as jnp
import numpy as np
from jax.experimental import pallas as pl
from jax.experimental.pallas import tpu as pltpu

# ---- shapes implied by the module -------------------------------------------
ACTION_SIZE = (2,)
OBSERVATION_SIZE = (3, 120, 160)


def _conv_out(n, k=3, s=2):
    return (n - k) // s + 1


def encoding_dimensions(observation_size):
    _, h, w = observation_size
    for _ in range(4):  # four stride-2 k=3 convs: 3->4->8->16->32 channels
        h, w = _conv_out(h), _conv_out(w)
    return 32 * h * w


ENC_DIM = encoding_dimensions(OBSERVATION_SIZE)   # 32 * 6 * 9 = 1728
HIDDEN = 8
ACTION_DIM = int(np.prod(ACTION_SIZE))            # 2

# Packed small-parameter block: a single (8, 128) f32 tile (one vreg).
#   lane 0                     : b1   (HIDDEN,)
#   lanes [1, 1+A)             : w2^T (HIDDEN, A)
#   row 0, lanes [1+A, 1+2A)   : b2   (A,)
_SMALL_LANES = 128
_B1_COL = 0
_W2T_COL = 1
_B2_COL = 1 + ACTION_DIM


# ---- Pallas kernel: policy MLP hot path (VPU/XLU/EUP only, no MXU) -----------
def policy_kernel(x_ref, w1_ref, small_ref, o_ref):
    # x:     (1, ENC_DIM)          recall, features on the lane axis
    # w1:    (HIDDEN, ENC_DIM)     native PyTorch (out, in), lane-dense
    # small: (HIDDEN, 128)         packed {b1, w2^T, b2} (single vreg load)
    # o:     (1, ACTION_DIM)
    x = x_ref[...]                                            # (1, D)
    w1 = w1_ref[...]                                          # (H, D)
    sp = small_ref[...]                                       # (8, 128), 1 vld
    b1 = sp[:, _B1_COL:_B1_COL + 1]                           # (H, 1)
    w2t = sp[:, _W2T_COL:_W2T_COL + ACTION_DIM]               # (H, A)
    b2 = sp[0:1, _B2_COL:_B2_COL + ACTION_DIM]                # (1, A)

    # Layer 1: h_j = sum_d w1[j, d] * x[d]
    #   sublane-broadcast of x + VPU multiply (~14 vregs/row) + XLU lane reduce
    h = jnp.sum(w1 * x, axis=-1, keepdims=True)               # (H, 1) f32
    h = jnp.maximum(h + b1, 0.0)                              # ReLU   (H, 1)

    # Layer 2: y_i = sum_j w2[i, j] * h_j
    #   lane-broadcast of h + VPU multiply + sublane reduce (32 MACs; no MXU)
    y = jnp.sum(w2t * h, axis=0, keepdims=True)               # (1, A)
    o_ref[...] = jnp.tanh(y + b2)                             # EUP tanh
    # NOTE: the (1, 2) store is a single masked vst per call/step — negligible
    # at this scale; padding the output to 128 lanes would just add a
    # wrapper-side slice.


def _cost(n_steps):
    return pl.CostEstimate(
        flops=n_steps * (2 * ENC_DIM * HIDDEN + 2 * HIDDEN * ACTION_DIM),
        transcendentals=n_steps * ACTION_DIM,
        bytes_accessed=4 * (n_steps * ENC_DIM + HIDDEN * ENC_DIM
                            + HIDDEN * _SMALL_LANES + n_steps * ACTION_DIM),
    )


# Gridless single-call variant (exact forward() semantics, 3 VMEM operands).
_policy_call_single = pl.pallas_call(
    policy_kernel,
    out_shape=jax.ShapeDtypeStruct((1, ACTION_DIM), jnp.float32),
    in_specs=[pl.BlockSpec(memory_space=pltpu.MemorySpace.VMEM)] * 3,
    out_specs=pl.BlockSpec(memory_space=pltpu.MemorySpace.VMEM),
    cost_estimate=_cost(1),
)


def _build_stepped_call(n_steps):
    """Gridded variant over a step/batch axis.

    w1 and the packed small block use constant index_maps, so they are DMA'd
    once and stay VMEM-resident across all grid iterations; only the 1x1728
    recall row streams per step.  "parallel" lets v7x's two TCs split the axis.
    """
    grid_spec = pltpu.PrefetchScalarGridSpec(
        num_scalar_prefetch=0,
        grid=(n_steps,),
        in_specs=[
            pl.BlockSpec((None, 1, ENC_DIM), lambda t: (t, 0, 0)),        # recall row
            pl.BlockSpec((HIDDEN, ENC_DIM), lambda t: (0, 0)),            # w1: resident
            pl.BlockSpec((HIDDEN, _SMALL_LANES), lambda t: (0, 0)),       # packed: resident
        ],
        out_specs=pl.BlockSpec((None, 1, ACTION_DIM), lambda t: (t, 0, 0)),
    )
    return pl.pallas_call(
        policy_kernel,
        out_shape=jax.ShapeDtypeStruct((n_steps, 1, ACTION_DIM), jnp.float32),
        grid_spec=grid_spec,
        compiler_params=pltpu.CompilerParams(dimension_semantics=("parallel",)),
        cost_estimate=_cost(n_steps),
    )


def prepare_params(w1, b1, w2, b2):
    """One-time layout prep, OUTSIDE the per-call hot path.

    w1 stays in its native PyTorch (out=8, in=1728) layout (no transpose);
    the tiny b1 / w2^T / b2 are packed into one (8, 128) f32 block.
    """
    w1 = jnp.asarray(w1, jnp.float32)                                   # (H, D)
    small = jnp.zeros((HIDDEN, _SMALL_LANES), jnp.float32)
    small = small.at[:, _B1_COL].set(jnp.asarray(b1, jnp.float32))
    small = small.at[:, _W2T_COL:_W2T_COL + ACTION_DIM].set(
        jnp.asarray(w2, jnp.float32).T)
    small = small.at[0, _B2_COL:_B2_COL + ACTION_DIM].set(
        jnp.asarray(b2, jnp.float32))
    return w1, small


@jax.jit
def conv_ltd_forward(recall, params):
    """recall: (ENC_DIM,) f32. Returns shape ACTION_SIZE, matching
    `self.policy(recall).view(*self.action_size)` in PyTorch."""
    w1, small = params
    x2d = recall.reshape(1, ENC_DIM)        # metadata-only reshape (no transpose)
    out = _policy_call_single(x2d, w1, small)
    return out.reshape(*ACTION_SIZE)


@jax.jit
def conv_ltd_forward_steps(recalls, params):
    """Amortized variant for rollout/step loops or batches.

    recalls: (T, ENC_DIM) f32. Returns (T,) + ACTION_SIZE. Weights are
    VMEM-resident across the T grid steps (one DMA per call, not per step).
    """
    w1, small = params
    n_steps = recalls.shape[0]
    call = _build_stepped_call(n_steps)
    out = call(recalls.reshape(n_steps, 1, ENC_DIM), w1, small)
    return out.reshape((n_steps,) + ACTION_SIZE)


# ---- deterministic parameter init (PyTorch nn.Linear-style uniform) ----------
def init_linear(key, out_features, in_features):
    kw, kb = jax.random.split(key)
    bound = 1.0 / np.sqrt(in_features)
    w = jax.random.uniform(kw, (out_features, in_features), jnp.float32,
                           -bound, bound)
    b = jax.random.uniform(kb, (out_features,), jnp.float32, -bound, bound)
    return w, b


if __name__ == "__main__":
    root = jax.random.PRNGKey(0)
    k_x, k_l1, k_l2, k_xs = jax.random.split(root, 4)

    # forward() input: the flat recall/encoding vector.
    recall = jax.random.normal(k_x, (ENC_DIM,), jnp.float32)

    w1, b1 = init_linear(k_l1, HIDDEN, ENC_DIM)       # policy[0]: Linear(1728, 8)
    w2, b2 = init_linear(k_l2, ACTION_DIM, HIDDEN)    # policy[2]: Linear(8, 2)

    params = prepare_params(w1, b1, w2, b2)           # one-time layout prep

    # pure-JAX reference (f32 end-to-end, same math as the PyTorch module)
    def ref_forward(r):
        return jnp.tanh(jnp.maximum(r @ w1.T + b1, 0.0) @ w2.T + b2)

    # 1) single-call forward (exact module semantics)
    out = jax.block_until_ready(conv_ltd_forward(recall, params))
    assert out.shape == ACTION_SIZE, out.shape
    np.testing.assert_allclose(
        np.asarray(out),
        np.asarray(ref_forward(recall).reshape(*ACTION_SIZE)),
        rtol=1e-5, atol=1e-5)

    # 2) amortized stepped variant (weights VMEM-resident across the grid)
    T = 8
    recalls = jax.random.normal(k_xs, (T, ENC_DIM), jnp.float32)
    outs = jax.block_until_ready(conv_ltd_forward_steps(recalls, params))
    assert outs.shape == (T,) + ACTION_SIZE, outs.shape
    np.testing.assert_allclose(
        np.asarray(outs),
        np.asarray(jax.vmap(ref_forward)(recalls)),
        rtol=1e-5, atol=1e-5)

    print("KERNEL_OK")
</pallas_src>

<mosaic_0001>
module attributes {stable_mosaic.version = 11 : i64} {
  func.func @policy_kernel(%arg0: memref<1x1728xf32, #tpu.memory_space<vmem>>, %arg1: memref<8x1728xf32, #tpu.memory_space<vmem>>, %arg2: memref<8x128xf32, #tpu.memory_space<vmem>>, %arg3: memref<1x2xf32, #tpu.memory_space<vmem>>) attributes {dimension_semantics = [], scalar_prefetch = 0 : i64, scratch_operands = 0 : i64, tpu.core_type = #tpu.core_type<tc>} {
    %c0 = arith.constant 0 : index
    %c0_0 = arith.constant 0 : index
    %0 = vector.load %arg0[%c0, %c0_0] : memref<1x1728xf32, #tpu.memory_space<vmem>>, vector<1x1728xf32>
    %c0_1 = arith.constant 0 : index
    %c0_2 = arith.constant 0 : index
    %1 = vector.load %arg1[%c0_1, %c0_2] : memref<8x1728xf32, #tpu.memory_space<vmem>>, vector<8x1728xf32>
    %c0_3 = arith.constant 0 : index
    %c0_4 = arith.constant 0 : index
    %2 = vector.load %arg2[%c0_3, %c0_4] : memref<8x128xf32, #tpu.memory_space<vmem>>, vector<8x128xf32>
    %3 = vector.extract_strided_slice %2 {offsets = [0, 0], sizes = [8, 1], strides = [1, 1]} : vector<8x128xf32> to vector<8x1xf32>
    %4 = vector.extract_strided_slice %2 {offsets = [0, 1], sizes = [8, 2], strides = [1, 1]} : vector<8x128xf32> to vector<8x2xf32>
    %5 = vector.extract_strided_slice %2 {offsets = [0, 3], sizes = [1, 2], strides = [1, 1]} : vector<8x128xf32> to vector<1x2xf32>
    %6 = vector.broadcast %0 : vector<1x1728xf32> to vector<8x1728xf32>
    %7 = arith.mulf %1, %6 : vector<8x1728xf32>
    %cst = arith.constant dense<0.000000e+00> : vector<8xf32>
    %8 = vector.multi_reduction <add>, %7, %cst [1] : vector<8x1728xf32> to vector<8xf32>
    %9 = vector.shape_cast %8 : vector<8xf32> to vector<8x1xf32>
    %10 = arith.addf %9, %3 : vector<8x1xf32>
    %cst_5 = arith.constant 0.000000e+00 : f32
    %11 = vector.broadcast %cst_5 : f32 to vector<8x1xf32>
    %12 = arith.maximumf %10, %11 : vector<8x1xf32>
    %13 = vector.broadcast %12 : vector<8x1xf32> to vector<8x2xf32>
    %14 = arith.mulf %4, %13 : vector<8x2xf32>
    %cst_6 = arith.constant dense<0.000000e+00> : vector<2xf32>
    %15 = vector.multi_reduction <add>, %14, %cst_6 [0] : vector<8x2xf32> to vector<2xf32>
    %16 = vector.shape_cast %15 : vector<2xf32> to vector<1x2xf32>
    %17 = arith.addf %16, %5 : vector<1x2xf32>
    %18 = math.tanh %17 : vector<1x2xf32>
    %c0_7 = arith.constant 0 : index
    %c0_8 = arith.constant 0 : index
    %19 = vector.load %arg3[%c0_7, %c0_8] : memref<1x2xf32, #tpu.memory_space<vmem>>, vector<1x2xf32>
    tpu.vector_store %arg3[%c0_7, %c0_8], %18 {strides = array<i32>} : memref<1x2xf32, #tpu.memory_space<vmem>>, vector<1x2xf32>,
    return
  }
}

</mosaic_0001>

<bundles_post_ra>
// kernel: conv_ltd_forward.1
= control target key start
LH: loop header
LB: loop body
LE: loop exit
PB: predicated region body
PF: predicated region fallthrough
CT: control target
= control target key end

     0   :  { %8 = vsyncpa [#allocation3], 0  ;;  %s304_s0 = inlined_call_operand.vmem [shape: f32[1,1728], index: 0, kind: input, shape index: {}]   ;;  %s305_s1 = inlined_call_operand.hbm [shape: f32[8,1728], index: 1, kind: input, shape index: {}]   ;;  %s306_s2 = inlined_call_operand.vmem [shape: f32[8,128], index: 2, kind: input, shape index: {}]   ;;  %s307_s3 = inlined_call_operand.hbm [shape: f32[1,2], index: 3, kind: output, shape index: {}]  }
   0x1   :  { %9 = vsyncpa [#allocation4], 0  ;;  %s246_s12 = smov [#allocation2]   ;;  %s198_s16 = scalar_lea.hbm %s305_s1, 1792 }
   0x2   :  { %s18_s13 = sshll.u32 %s246_s12, 4  ;;  %p199_p0 = scmp.ne.s32.totalorder %s305_s1, %s198_s16  ;;  %s19_s13 = int_to_ptr.vmem [resolvable:$true] %s18_s13 }
   0x3   :  { %p202_p1 = scmp.lt.u32.totalorder %s198_s16, %s305_s1 }
   0x5   :  { %p204_p2 = pnand %p202_p1, %p199_p0 }
   0x7   :  { %207 = shalt.err (!%p204_p2)
}
   0x8   :  { %s208_s21 = scalar_lea.vmem %s19_s13, 1792  ;;  %p213_p4 = scmp.lt.s32.totalorder %s19_s13, %s19_s13 }
   0x9   :  { %p209_p3 = scmp.ne.s32.totalorder %s19_s13, %s208_s21  ;;  %p214_p5 = scmp.lt.s32.totalorder %s208_s21, %s208_s21 }
   0xb   :  { %p215_p6 = por %p214_p5, %p213_p4 }
   0xd   :  { %p216_p7 = pnand %p215_p6, %p209_p3 }
   0xf   :  { %219 = shalt.err (!%p216_p7)
}
  0x10   :  { %21 = dma.hbm_to_vmem [thread:$0]  %s305_s1, 1792, %s19_s13, [#allocation3]  }
  0x11   :  { %242 = dma.done.wait [#allocation3], 1792  }
  0x12   :  { %243 = vsyncadd [#allocation3], 4294965504  ;;  %v46_v0 = vlaneseq  ;;  %v27_v5 = vld [vmem:[%s304_s0] sm:$0xff]  ;;  %v30_v8 = vld [vmem:[#allocation2 + $0x8] sm:$0xff]  ;;  %vm142_vm0 = vcmask 523264   ;;  %s248_s28 = smov 126  }
  0x13   :  { %v29_v7 = vld [vmem:[#allocation2] sm:$0xff]  ;;  %v31_v13 = vld [vmem:[#allocation2 + $0x10] sm:$0xff]  ;;  %v32_v18 = vld [vmem:[#allocation2 + $0x18] sm:$0xff]  ;;  %vm155_vm1 = vcmask 23560   ;;  %s250_s29 = smov [#allocation5]   ;;  %vm173_vm2 = vcmask 8192  }
  0x14   :  { %v47_v1 = vshrl.u32 %v46_v0, 7  ;;  %v33_v22 = vld [vmem:[#allocation2 + $0x20] sm:$0xff]  ;;  %v34_v27 = vld [vmem:[#allocation2 + $0x28] sm:$0xff]  ;;  %v35_v32 = vld [vmem:[#allocation2 + $0x30] sm:$0xff]  ;;  %s181_s30 = sshll.u32 %s250_s29, 4  ;;  %s182_s30 = int_to_ptr.vmem [resolvable:$true] %s181_s30 }
  0x15   :  { %v28_v31 = vld [vmem:[%s304_s0 + $0x8] sm:$0x3f]  ;;  %v36_v36 = vld [vmem:[#allocation2 + $0x38] sm:$0xff]  ;;  %v37_v40 = vld [vmem:[#allocation2 + $0x40] sm:$0xff]  ;;  %s220_s4 = scalar_lea.vmem %s182_s30, 16  ;;  %s224_s5 = scalar_lea.vmem %s182_s30, 32 }
  0x16   :  { %v48_v2 = vsub.s32 0, %v47_v1  ;;  %v52_v3 = vsub.s32 1, %v47_v1  ;;  %v56_v4 = vsub.s32 2, %v47_v1  ;;  %v60_v6 = vsub.s32 3, %v47_v1  ;;  %v38_v44 = vld [vmem:[#allocation2 + $0x48] sm:$0xff]  ;;  %v39_v48 = vld [vmem:[#allocation2 + $0x50] sm:$0xff]  ;;  %p221_p8 = scmp.ne.s32.totalorder %s182_s30, %s220_s4  ;;  %p225_p9 = scmp.lt.s32.totalorder %s182_s30, %s182_s30 }
  0x17   :  { %v64_v12 = vsub.s32 4, %v47_v1  ;;  %v68_v15 = vsub.s32 5, %v47_v1  ;;  %v72_v20 = vsub.s32 6, %v47_v1  ;;  %v76_v24 = vsub.s32 7, %v47_v1  ;;  %v40_v52 = vld [vmem:[#allocation2 + $0x58] sm:$0xff]  ;;  %v42_v54 = vld [vmem:[#allocation2 + $0x68] sm:$0xff]  ;;  %p226_p10 = scmp.lt.s32.totalorder %s224_s5, %s220_s4 }
  0x18   :  { %v49_v9 = vrot.slane %v27_v5, %v48_v2  ;;  %v53_v10 = vrot.slane %v27_v5, %v52_v3  ;;  %v57_v11 = vrot.slane %v27_v5, %v56_v4  ;;  %v61_v14 = vrot.slane %v27_v5, %v60_v6  ;;  %v41_v58 = vld [vmem:[#allocation2 + $0x60] sm:$0xff] }
  0x19   :  { %v65_v19 = vrot.slane %v27_v5, %v64_v12  ;;  %v69_v23 = vrot.slane %v27_v5, %v68_v15  ;;  %v73_v28 = vrot.slane %v27_v5, %v72_v20  ;;  %v77_v33 = vrot.slane %v27_v5, %v76_v24  ;;  %v43_v5 = vld [vmem:[%s306_s2] sm:$0xff]  ;;  %s249_s2 = smov 127   ;;  %p227_p11 = por %p226_p10, %p225_p9 }
  0x1a   :  { %v116_v16 = vmul.f32 %v49_v9, %v29_v7  ;;  %v117_v17 = vmul.f32 %v53_v10, %v30_v8  ;;  %v118_v21 = vmul.f32 %v57_v11, %v31_v13  ;;  %v119_v25 = vmul.f32 %v61_v14, %v32_v18  ;;  %164 = vrot.lane.b32.xlu1 %v43_v5, %s248_s28 }
  0x1b   :  { %v120_v29 = vmul.f32 %v65_v19, %v33_v22  ;;  %v121_v34 = vmul.f32 %v69_v23, %v34_v27  ;;  %v81_v37 = vrot.slane %v28_v31, %v48_v2  ;;  %v122_v38 = vmul.f32 %v73_v28, %v35_v32  ;;  %p228_p12 = pnand %p227_p11, %p221_p8 }
  0x1c   :  { %v130_v26 = vadd.f32 %v117_v17, %v116_v16  ;;  %v85_v41 = vrot.slane %v28_v31, %v52_v3  ;;  %v123_v42 = vmul.f32 %v77_v33, %v36_v36  ;;  %v89_v45 = vrot.slane %v28_v31, %v56_v4 }
  0x1d   :  { %v124_v46 = vmul.f32 %v81_v37, %v37_v40  ;;  %v93_v49 = vrot.slane %v28_v31, %v60_v6  ;;  %v101_v53 = vrot.slane %v28_v31, %v68_v15  ;;  %v97_v55 = vrot.slane %v28_v31, %v64_v12 }
  0x1e   :  { %v131_v30 = vadd.f32 %v130_v26, %v118_v21  ;;  %v125_v50 = vmul.f32 %v85_v41, %v38_v44  ;;  %v126_v56 = vmul.f32 %v89_v45, %v39_v48  ;;  %v247_v4 = vmov 0  }
  0x1f   :  { %v127_v59 = vmul.f32 %v93_v49, %v40_v52  ;;  %v129_v61 = vmul.f32 %v101_v53, %v42_v54  ;;  %v128_v62 = vmul.f32 %v97_v55, %v41_v58  ;;  %195 = vset.pattern.permute.xlu0 %v247_v4 }
  0x20   :  { %v132_v35 = vadd.f32 %v131_v30, %v119_v25 }
  0x21   :  { %v143_v1 = vsel %vm142_vm0, %v129_v61, 0.0 }
  0x22   :  { %v133_v39 = vadd.f32 %v132_v35, %v120_v29 }
  0x24   :  { %v134_v43 = vadd.f32 %v133_v39, %v121_v34 }
  0x26   :  { %v135_v47 = vadd.f32 %v134_v43, %v122_v38 }
  0x28   :  { %v136_v51 = vadd.f32 %v135_v47, %v123_v42 }
  0x2a   :  { %v137_v57 = vadd.f32 %v136_v51, %v124_v46 }
  0x2c   :  { %v138_v60 = vadd.f32 %v137_v57, %v125_v50 }
  0x2e   :  { %v139_v63 = vadd.f32 %v138_v60, %v126_v56 }
  0x30   :  { %v140_v0 = vadd.f32 %v139_v63, %v127_v59 }
  0x32   :  { %v141_v2 = vadd.f32 %v140_v0, %v128_v62 }
  0x34   :  { %v144_v3 = vadd.f32 %v143_v1, %v141_v2 }
  0x36   :  { %145 = vadd.xlane.f32.xlu0 %v144_v3 }
  0x8c   :  { %v165_v17 = vpop.permute.xlu1 %164 }
  0xc3   :  { %v146_v6 = vpop.xlane.xlu0 %145 }
  0xc4   :  { %v147_v7 = vadd.f32 %v146_v6, %v43_v5 }
  0xc6   :  { %v148_v8 = vmax.f32 %v147_v7, 0.0 }
  0xc8   :  { %151 = vperm.xlu0 %195, %v148_v8  }
 0x147   :  { %v152_v9 = vpop.permute.xlu0 %151 }
 0x148   :  { %v154_v10 = vmul.f32 %v152_v9, %v43_v5 }
 0x14a   :  { %v156_v11 = vsel %vm155_vm1, %v154_v10, 0.0 }
 0x14b   :  { %v157_v12 = vrot.slane %v156_v11, 4 }
 0x14d   :  { %v158_v13 = vadd.f32 %v157_v12, %v156_v11 }
 0x14f   :  { %v159_v14 = vrot.slane %v158_v13, 2 }
 0x151   :  { %v160_v15 = vadd.f32 %v159_v14, %v158_v13 }
 0x153   :  { %v161_v16 = vrot.slane %v160_v15, 1 }
 0x155   :  { %v162_v18 = vadd.f32 %v161_v16, %v160_v15 }
 0x157   :  { %v167_v19 = vadd.f32 %v165_v17, %v162_v18 }
 0x159   :  { %196 = vtanh.f32 %v167_v19 }
 0x163   :  { %v197_v20 = vpop.eup %196 }
 0x164   :  { %170 = vrot.lane.b32.xlu1 %v197_v20, %s249_s2 }
 0x1d6   :  { %v171_v21 = vpop.permute.xlu1 %170 }
 0x1d7   :  { %174 = vst.msk [vmem:[#allocation5] sm:$0x1] %vm173_vm2, %v171_v21 }
 0x1d8   :  { %231 = shalt.err (!%p228_p12)
}
 0x1d9   :  { %s232_s8 = scalar_lea.hbm %s307_s3, 16 }
 0x1da   :  { %p233_p13 = scmp.ne.s32.totalorder %s307_s3, %s232_s8  ;;  %p236_p0 = scmp.lt.u32.totalorder %s232_s8, %s307_s3 }
 0x1dc   :  { %p238_p1 = pnand %p236_p0, %p233_p13 }
 0x1de   :  { %241 = shalt.err (!%p238_p1)
}
 0x1df   :  { %184 = dma.vmem_to_hbm [thread:$0]  %s182_s30, 16, %s307_s3, [#allocation4]  }
 0x1e0   :  { %244 = dma.done.wait [#allocation4], 16  }
 0x1e1   :  { %245 = vsyncadd [#allocation4], 4294967280 }
 0x1e2   :  { %188 = vsyncpa [#allocation3], 1 }
 0x1e3   :  { %189 = vsyncpa [#allocation4], 1 }

</bundles_post_ra>
